<compile_context>
chip_gen: v6e
topology: v6e:2x2x1
jax: 0.10.0
libtpu: 0.0.40
codegen_flags: <defaults>
</compile_context>

<pallas_src>
import jax
import jax.numpy as jnp
from jax import lax
from jax.experimental import pallas as pl
from jax.experimental.pallas import tpu as pltpu


def _round_up(x, m):
    return ((x + m - 1) // m) * m


def _edge_update_kernel(a_ref, r_ref, out_ref, acc_ref):
    """One (edge-tile, node-tile) grid step.

    a_ref:   VMEM int32  [BE, 2]       global endpoint indices for this edge tile
    r_ref:   VMEM float  [TN, F_pad]   node-feature tile k (zero-padded)
    out_ref: VMEM float  [BE, F_pad]   edge-feature output tile (written at last k)
    acc_ref: VMEM f32    [BE, F_pad]   accumulator across node tiles
    """
    k = pl.program_id(1)

    @pl.when(k == 0)
    def _init():
        acc_ref[...] = jnp.zeros_like(acc_ref)

    idx = a_ref[...]                                   # (BE, 2)
    r = r_ref[...]                                     # (TN, F_pad)
    be = idx.shape[0]
    tn = r.shape[0]

    # Global column (node) indices covered by this node tile.
    col = k * tn + lax.broadcasted_iota(jnp.int32, (be, tn), 1)

    # One-hot(+) selection matrix built in int32, converted to r.dtype once.
    # Row j has a 1 at columns a[j,0] and a[j,1] (2 if both endpoints coincide,
    # which correctly yields r[i] + r[i]).
    cnt = (col == idx[:, 0:1]).astype(jnp.int32) + (col == idx[:, 1:2]).astype(jnp.int32)
    sel = cnt.astype(r.dtype)

    # Gather-as-matmul on the MXU, accumulated in f32 across node tiles.
    acc_ref[...] += jnp.dot(sel, r, preferred_element_type=jnp.float32)

    @pl.when(k == pl.num_programs(1) - 1)
    def _finalize():
        out_ref[...] = acc_ref[...].astype(out_ref.dtype)


def edge_update(r, e, a, *, block_edges=512, max_node_tile=1024):
    """Pallas implementation of EdgeUpdateModule.forward(r, e, a):
       out[j] = r[a[j, 0]] + r[a[j, 1]]   (e is unused by the forward pass)."""
    del e  # unused by the reference forward pass
    N, F = r.shape
    E = a.shape[0]
    a = a.astype(jnp.int32)
    itemsize = jnp.dtype(r.dtype).itemsize

    # ---- tiling / padding (pads could be hoisted to graph-setup time) -----
    F_pad = _round_up(F, 128)                      # lane-dense, MXU-aligned
    BE = min(block_edges, _round_up(E, 128))       # edge tile (don't over-pad tiny E)
    E_pad = _round_up(E, BE)
    TN = min(max_node_tile, _round_up(N, 128))     # node (contraction) tile
    N_pad = _round_up(N, TN)

    r_pad = jnp.pad(r, ((0, N_pad - N), (0, F_pad - F)))
    a_pad = jnp.pad(a, ((0, E_pad - E), (0, 0)))   # padded edges gather 2*r[0], sliced off

    n_edge_tiles = E_pad // BE
    n_node_tiles = N_pad // TN
    grid = (n_edge_tiles, n_node_tiles)

    # r is fully resident (constant index map) when there is a single node
    # tile -> single-buffer it; otherwise let node tiles double-buffer.
    if n_node_tiles == 1:
        r_bufs = 1
        r_spec = pl.BlockSpec((TN, F_pad), lambda i, k: (k, 0),
                              pipeline_mode=pl.Buffered(1))
    else:
        r_bufs = 2
        r_spec = pl.BlockSpec((TN, F_pad), lambda i, k: (k, 0))

    # Explicit scoped-VMEM budget: actual buffer footprint + temps + headroom.
    vmem_bytes = int(
        r_bufs * TN * F_pad * itemsize             # r tile buffer(s)
        + 2 * BE * 128 * 4                         # a tiles (last dim lane-padded)
        + 2 * BE * F_pad * itemsize                # output tiles (double-buffered)
        + BE * F_pad * 4                           # f32 accumulator scratch
        + 3 * BE * TN * 4                          # col / cnt / sel intermediates
        + (4 << 20)                                # headroom
    )
    vmem_bytes = min(vmem_bytes, 64 << 20)

    # Advisory cost for XLA's scheduler.
    r_reads = 1 if n_node_tiles == 1 else n_edge_tiles
    cost = pl.CostEstimate(
        flops=2 * E_pad * N_pad * F_pad,
        transcendentals=0,
        bytes_accessed=int(r_reads * N_pad * F_pad * itemsize
                           + E_pad * 2 * 4
                           + E_pad * F_pad * itemsize),
    )

    out = pl.pallas_call(
        _edge_update_kernel,
        out_shape=jax.ShapeDtypeStruct((E_pad, F_pad), r.dtype),
        grid=grid,
        in_specs=[
            # per-edge-tile endpoint indices (last dim == full array dim 2)
            pl.BlockSpec((BE, 2), lambda i, k: (i, 0)),
            # node-feature tile(s)
            r_spec,
        ],
        out_specs=pl.BlockSpec((BE, F_pad), lambda i, k: (i, 0)),
        scratch_shapes=[pltpu.VMEM((BE, F_pad), jnp.float32)],
        compiler_params=pltpu.CompilerParams(
            dimension_semantics=("parallel", "arbitrary"),
            vmem_limit_bytes=vmem_bytes,
        ),
        cost_estimate=cost,
    )(a_pad, r_pad)

    if E_pad != E or F_pad != F:
        out = out[:E, :F]
    return out


if __name__ == "__main__":
    key = jax.random.PRNGKey(0)
    k_r, k_e, k_a = jax.random.split(key, 3)

    N, F = 16, 32     # nodes, feature dim
    E = 32            # edges

    r = jax.random.normal(k_r, (N, F), dtype=jnp.float32)          # node vectors
    e = jax.random.normal(k_e, (E, F), dtype=jnp.float32)          # edge vectors (unused)
    a = jax.random.randint(k_a, (E, 2), 0, N, dtype=jnp.int32)     # neighbor list

    out = edge_update(r, e, a)
    out = jax.block_until_ready(out)

    # Reference check (pure JAX)
    ref = r[a[:, 0]] + r[a[:, 1]]
    assert out.shape == (E, F)
    assert jnp.allclose(out, ref, atol=1e-6), "mismatch vs reference"

    print("KERNEL_OK")
</pallas_src>

<mosaic_0001>
module attributes {stable_mosaic.version = 11 : i64} {
  func.func @_edge_update_kernel(%arg0: i32, %arg1: i32, %arg2: memref<128x2xi32, #tpu.memory_space<vmem>>, %arg3: memref<128x128xf32, #tpu.memory_space<vmem>>, %arg4: memref<128x128xf32, #tpu.memory_space<vmem>>, %arg5: memref<128x128xf32, #tpu.memory_space<vmem>>) attributes {dimension_semantics = [#tpu.dimension_semantics<parallel>, #tpu.dimension_semantics<arbitrary>], iteration_bounds = array<i64: 1, 1>, scalar_prefetch = 0 : i64, scratch_operands = 1 : i64, tpu.core_type = #tpu.core_type<tc>, window_params = [{transform_indices = @transform_0, window_bounds = array<i64: 128, 2>}, {pipeline_mode = #tpu.pipeline_mode<synchronous>, transform_indices = @transform_1, window_bounds = array<i64: 128, 128>}, {transform_indices = @transform_2, window_bounds = array<i64: 128, 128>}]} {
    %c0_i32 = arith.constant 0 : i32
    %0 = arith.cmpi eq, %arg1, %c0_i32 : i32
    %1 = arith.extui %0 : i1 to i32
    %c0_i32_0 = arith.constant 0 : i32
    %2 = arith.cmpi ne, %1, %c0_i32_0 : i32
    scf.if %2 {
      %cst_10 = arith.constant 0.000000e+00 : f32
      %26 = vector.broadcast %cst_10 : f32 to vector<128x128xf32>
      %c0_11 = arith.constant 0 : index
      %c0_12 = arith.constant 0 : index
      %27 = vector.load %arg5[%c0_11, %c0_12] : memref<128x128xf32, #tpu.memory_space<vmem>>, vector<128x128xf32>
      tpu.vector_store %arg5[%c0_11, %c0_12], %26 {strides = array<i32>} : memref<128x128xf32, #tpu.memory_space<vmem>>, vector<128x128xf32>,
    } else {
    }
    %c0 = arith.constant 0 : index
    %c0_1 = arith.constant 0 : index
    %3 = vector.load %arg2[%c0, %c0_1] : memref<128x2xi32, #tpu.memory_space<vmem>>, vector<128x2xi32>
    %c0_2 = arith.constant 0 : index
    %c0_3 = arith.constant 0 : index
    %4 = vector.load %arg3[%c0_2, %c0_3] : memref<128x128xf32, #tpu.memory_space<vmem>>, vector<128x128xf32>
    %c128_i32 = arith.constant 128 : i32
    %5 = arith.muli %arg1, %c128_i32 : i32
    %6 = tpu.iota {dimensions = array<i32: 1>} : vector<128x128xi32>
    %7 = vector.broadcast %5 : i32 to vector<128x128xi32>
    %8 = arith.addi %7, %6 : vector<128x128xi32>
    %9 = vector.extract_strided_slice %3 {offsets = [0, 0], sizes = [128, 1], strides = [1, 1]} : vector<128x2xi32> to vector<128x1xi32>
    %10 = vector.broadcast %9 : vector<128x1xi32> to vector<128x128xi32>
    %11 = arith.cmpi eq, %8, %10 : vector<128x128xi32>
    %12 = arith.extui %11 : vector<128x128xi1> to vector<128x128xi32>
    %13 = vector.extract_strided_slice %3 {offsets = [0, 1], sizes = [128, 1], strides = [1, 1]} : vector<128x2xi32> to vector<128x1xi32>
    %14 = vector.broadcast %13 : vector<128x1xi32> to vector<128x128xi32>
    %15 = arith.cmpi eq, %8, %14 : vector<128x128xi32>
    %16 = arith.extui %15 : vector<128x128xi1> to vector<128x128xi32>
    %17 = arith.addi %12, %16 : vector<128x128xi32>
    %18 = arith.sitofp %17 : vector<128x128xi32> to vector<128x128xf32>
    %c0_4 = arith.constant 0 : index
    %c0_5 = arith.constant 0 : index
    %19 = vector.load %arg5[%c0_4, %c0_5] : memref<128x128xf32, #tpu.memory_space<vmem>>, vector<128x128xf32>
    %cst = arith.constant dense<0.000000e+00> : vector<128x128xf32>
    %20 = tpu.matmul %18, %4, %cst {dimension_numbers = #tpu.dot_dimension_numbers<[1], [0], [0], [1], [0, 0, 1, 1], [], []>} : vector<128x128xf32>, vector<128x128xf32>, vector<128x128xf32> -> vector<128x128xf32>
    %21 = arith.addf %19, %20 : vector<128x128xf32>
    %c0_6 = arith.constant 0 : index
    %c0_7 = arith.constant 0 : index
    %22 = vector.load %arg5[%c0_6, %c0_7] : memref<128x128xf32, #tpu.memory_space<vmem>>, vector<128x128xf32>
    tpu.vector_store %arg5[%c0_6, %c0_7], %21 {strides = array<i32>} : memref<128x128xf32, #tpu.memory_space<vmem>>, vector<128x128xf32>,
    %c0_i32_8 = arith.constant 0 : i32
    %23 = arith.cmpi eq, %arg1, %c0_i32_8 : i32
    %24 = arith.extui %23 : i1 to i32
    %c0_i32_9 = arith.constant 0 : i32
    %25 = arith.cmpi ne, %24, %c0_i32_9 : i32
    scf.if %25 {
      %c0_10 = arith.constant 0 : index
      %c0_11 = arith.constant 0 : index
      %26 = vector.load %arg5[%c0_10, %c0_11] : memref<128x128xf32, #tpu.memory_space<vmem>>, vector<128x128xf32>
      %c0_12 = arith.constant 0 : index
      %c0_13 = arith.constant 0 : index
      %27 = vector.load %arg4[%c0_12, %c0_13] : memref<128x128xf32, #tpu.memory_space<vmem>>, vector<128x128xf32>
      tpu.vector_store %arg4[%c0_12, %c0_13], %26 {strides = array<i32>} : memref<128x128xf32, #tpu.memory_space<vmem>>, vector<128x128xf32>,
    } else {
    }
    return
  }
  func.func @transform_0(%arg0: i32, %arg1: i32) -> (i32, i32) {
    %c0_i32 = arith.constant 0 : i32
    %c0_i32_0 = arith.constant 0 : i32
    return %arg0, %c0_i32 : i32, i32
  }
  func.func @transform_1(%arg0: i32, %arg1: i32) -> (i32, i32) {
    %c0_i32 = arith.constant 0 : i32
    %c0_i32_0 = arith.constant 0 : i32
    return %arg1, %c0_i32 : i32, i32
  }
  func.func @transform_2(%arg0: i32, %arg1: i32) -> (i32, i32) {
    %c0_i32 = arith.constant 0 : i32
    %c0_i32_0 = arith.constant 0 : i32
    return %arg0, %c0_i32 : i32, i32
  }
}

</mosaic_0001>

<bundles_post_ra>
// kernel: tpu_custom_call.1
= control target key start
LH: loop header
LB: loop body
LE: loop exit
PB: predicated region body
PF: predicated region fallthrough
CT: control target
= control target key end

     0   :  { %v669_v1 = vmov 1   ;;  %v670_v2 = vmov 0   ;;  %s896_s0 = inlined_call_operand.vmem [shape: s32[128,2], index: 0, kind: input, shape index: {}]   ;;  %s897_s1 = inlined_call_operand.vmem [shape: f32[128,128], index: 1, kind: input, shape index: {}]   ;;  %s898_s2 = inlined_call_operand.hbm [shape: f32[128,128], index: 2, kind: output, shape index: {}]  }
   0x1   :  { %v32_v0 = vld [vmem:[%s896_s0] sm:$0xff]  ;;  %631 = vset.pattern.permute.xlu1 %v669_v1  ;;  %630 = vset.pattern.permute.xlu0 %v670_v2  ;;  %v63_v4 = vld [vmem:[%s897_s1 + $0x78] sm:$0xff]  ;;  %v62_v5 = vld [vmem:[%s897_s1 + $0x70] sm:$0xff] }
   0x2   :  { %150 = vperm.xlu1 %631, %v32_v0   ;;  %70 = vperm.xlu0 %630, %v32_v0   ;;  %v40_v3 = vld [vmem:[%s896_s0 + $0x40] sm:$0xff]  ;;  %v706_v6 = vld [vmem:[%s896_s0 + $0x8] sm:$0xff] }
   0x3   :  { %593 = vmatprep.subr.mxu1 %v63_v4  ;;  %537 = vmatprep.subr.mxu0 %v63_v4  ;;  %v41_v7 = vld [vmem:[%s896_s0 + $0x48] sm:$0xff] }
   0x4   :  { %609 = vmatpush3.msra.mxu1 %v63_v4  ;;  %538 = vmatpush3.msra.mxu0 %v63_v4  ;;  %v61_v8 = vld [vmem:[%s897_s1 + $0x68] sm:$0xff] }
   0x5   :  { %594 = vmatprep.subr.mxu1 %v62_v5  ;;  %539 = vmatprep.subr.mxu0 %v62_v5 }
   0x6   :  { %174 = vperm.xlu1 %631, %v40_v3   ;;  %94 = vperm.xlu0 %630, %v40_v3  }
   0x7   :  { %7 = vsyncpa [#allocation4], 0  ;;  %v42_v9 = vld [vmem:[%s896_s0 + $0x50] sm:$0xff]  ;;  %610 = vmatpush3.msra.mxu1 %v62_v5  ;;  %v60_v10 = vld [vmem:[%s897_s1 + $0x60] sm:$0xff]  ;;  %540 = vmatpush3.msra.mxu0 %v62_v5  ;;  %v65_v34 = vlaneseq }
   0x8   :  { %595 = vmatprep.subr.mxu1 %v61_v8  ;;  %v59_v11 = vld [vmem:[%s897_s1 + $0x58] sm:$0xff]  ;;  %541 = vmatprep.subr.mxu0 %v61_v8  ;;  %v58_v13 = vld [vmem:[%s897_s1 + $0x50] sm:$0xff]  ;;  %v57_v14 = vld [vmem:[%s897_s1 + $0x48] sm:$0xff] }
   0x9   :  { %611 = vmatpush3.msra.mxu1 %v61_v8  ;;  %v729_v12 = vld [vmem:[%s896_s0 + $0x18] sm:$0xff]  ;;  %542 = vmatpush3.msra.mxu0 %v61_v8  ;;  %v34_v15 = vld [vmem:[%s896_s0 + $0x10] sm:$0xff]  ;;  %v744_v16 = vld [vmem:[%s896_s0 + $0x60] sm:$0xff]  ;;  %v818_v35 = vand.u32 127, %v65_v34 }
   0xa   :  { %632 = vset.pattern.permute.xlu1 %v670_v2  ;;  %73 = vperm.xlu0 %630, %v706_v6   ;;  %v56_v17 = vld [vmem:[%s897_s1 + $0x40] sm:$0xff]  ;;  %v55_v18 = vld [vmem:[%s897_s1 + $0x38] sm:$0xff]  ;;  %v37_v19 = vld [vmem:[%s896_s0 + $0x28] sm:$0xff] }
   0xb   :  { %97 = vperm.xlu1 %632, %v41_v7   ;;  %596 = vmatprep.subr.mxu1 %v60_v10  ;;  %v54_v20 = vld [vmem:[%s897_s1 + $0x30] sm:$0xff]  ;;  %v53_v21 = vld [vmem:[%s897_s1 + $0x28] sm:$0xff]  ;;  %v52_v23 = vld [vmem:[%s897_s1 + $0x20] sm:$0xff] }
   0xc   :  { %612 = vmatpush3.msra.mxu1 %v60_v10  ;;  %543 = vmatprep.subr.mxu0 %v60_v10  ;;  %v767_v22 = vld [vmem:[%s896_s0 + $0x70] sm:$0xff]  ;;  %v39_v24 = vld [vmem:[%s896_s0 + $0x38] sm:$0xff]  ;;  %v49_v28 = vld [vmem:[%s897_s1 + $0x8] sm:$0xff] }
   0xd   :  { %597 = vmatprep.subr.mxu1 %v59_v11  ;;  %544 = vmatpush3.msra.mxu0 %v60_v10  ;;  %v43_v25 = vld [vmem:[%s896_s0 + $0x58] sm:$0xff]  ;;  %v50_v27 = vld [vmem:[%s897_s1 + $0x10] sm:$0xff]  ;;  %v48_v29 = vld [vmem:[%s897_s1] sm:$0xff] }
   0xe   :  { %100 = vperm.xlu0 %630, %v42_v9   ;;  %613 = vmatpush3.msra.mxu1 %v59_v11  ;;  %v51_v26 = vld [vmem:[%s897_s1 + $0x18] sm:$0xff]  ;;  %v36_v30 = vld [vmem:[%s896_s0 + $0x20] sm:$0xff]  ;;  %v45_v31 = vld [vmem:[%s896_s0 + $0x68] sm:$0xff] }
   0xf   :  { %633 = vset.pattern.permute.xlu1 %v669_v1  ;;  %598 = vmatprep.subr.mxu1 %v58_v13  ;;  %v38_v32 = vld [vmem:[%s896_s0 + $0x30] sm:$0xff]  ;;  %v47_v33 = vld [vmem:[%s896_s0 + $0x78] sm:$0xff]  ;;  %s671_s0 = smov [#allocation3]  }
  0x10   :  { %177 = vperm.xlu1 %633, %v41_v7   ;;  %614 = vmatpush3.msra.mxu1 %v58_v13  ;;  %s494_s16 = sshll.u32 %s671_s0, 4  ;;  %s495_s16 = int_to_ptr.vmem [resolvable:$true] %s494_s16 }
  0x11   :  { %599 = vmatprep.subr.mxu1 %v57_v14  ;;  %545 = vmatprep.subr.mxu0 %v59_v11  ;;  %s647_s17 = scalar_lea.vmem %s495_s16, 2048  ;;  %p652_p1 = scmp.lt.s32.totalorder %s495_s16, %s495_s16 }
  0x12   :  { %79 = vperm.xlu0 %630, %v729_v12   ;;  %615 = vmatpush3.msra.mxu1 %v57_v14  ;;  %p648_p0 = scmp.ne.s32.totalorder %s495_s16, %s647_s17  ;;  %p653_p2 = scmp.lt.s32.totalorder %s647_s17, %s647_s17 }
  0x13   :  { %600 = vmatprep.subr.mxu1 %v56_v17  ;;  %546 = vmatpush3.msra.mxu0 %v59_v11 }
  0x14   :  { %634 = vset.pattern.permute.xlu1 %v670_v2  ;;  %616 = vmatpush3.msra.mxu1 %v56_v17  ;;  %p654_p3 = por %p653_p2, %p652_p1 }
  0x15   :  { %76 = vperm.xlu1 %634, %v34_v15   ;;  %601 = vmatprep.subr.mxu1 %v55_v18 }
  0x16   :  { %106 = vperm.xlu0 %630, %v744_v16   ;;  %617 = vmatpush3.msra.mxu1 %v55_v18  ;;  %p655_p4 = pnand %p654_p3, %p648_p0 }
  0x17   :  { %602 = vmatprep.subr.mxu1 %v54_v20  ;;  %547 = vmatprep.subr.mxu0 %v58_v13 }
  0x18   :  { %618 = vmatpush3.msra.mxu1 %v54_v20  ;;  %548 = vmatpush3.msra.mxu0 %v58_v13 }
  0x19   :  { %635 = vset.pattern.permute.xlu1 %v669_v1  ;;  %603 = vmatprep.subr.mxu1 %v53_v21 }
  0x1a   :  { %156 = vperm.xlu1 %635, %v34_v15   ;;  %85 = vperm.xlu0 %630, %v37_v19  }
  0x1b   :  { %619 = vmatpush3.msra.mxu1 %v53_v21  ;;  %549 = vmatprep.subr.mxu0 %v57_v14 }
  0x1c   :  { %604 = vmatprep.subr.mxu1 %v52_v23  ;;  %550 = vmatpush3.msra.mxu0 %v57_v14 }
  0x1d   :  { %620 = vmatpush3.msra.mxu1 %v52_v23  ;;  %551 = vmatprep.subr.mxu0 %v56_v17 }
  0x1e   :  { %180 = vperm.xlu1 %635, %v42_v9   ;;  %112 = vperm.xlu0 %630, %v767_v22  }
  0x1f   :  { %605 = vmatprep.subr.mxu1 %v51_v26  ;;  %552 = vmatpush3.msra.mxu0 %v56_v17 }
  0x20   :  { %621 = vmatpush3.msra.mxu1 %v51_v26  ;;  %553 = vmatprep.subr.mxu0 %v55_v18 }
  0x21   :  { %606 = vmatprep.subr.mxu1 %v50_v27  ;;  %554 = vmatpush3.msra.mxu0 %v55_v18 }
  0x22   :  { %636 = vset.pattern.permute.xlu1 %v670_v2  ;;  %91 = vperm.xlu0 %630, %v39_v24  }
  0x23   :  { %103 = vperm.xlu1 %636, %v43_v25   ;;  %622 = vmatpush3.msra.mxu1 %v50_v27 }
  0x24   :  { %607 = vmatprep.subr.mxu1 %v49_v28  ;;  %555 = vmatprep.subr.mxu0 %v54_v20 }
  0x25   :  { %623 = vmatpush3.msra.mxu1 %v49_v28  ;;  %556 = vmatpush3.msra.mxu0 %v54_v20 }
  0x26   :  { %644 = vset.pattern.permute.xlu0 %v669_v1  ;;  %608 = vmatprep.subr.mxu1 %v48_v29 }
  0x27   :  { %637 = vset.pattern.permute.xlu1 %v669_v1  ;;  %153 = vperm.xlu0 %644, %v706_v6  }
  0x28   :  { %183 = vperm.xlu1 %637, %v43_v25   ;;  %624 = vmatpush3.msra.mxu1 %v48_v29 }
  0x29   :  { %557 = vmatprep.subr.mxu0 %v53_v21 }
  0x2a   :  { %558 = vmatpush3.msra.mxu0 %v53_v21 }
  0x2b   :  { %159 = vperm.xlu0 %644, %v729_v12   ;;  %559 = vmatprep.subr.mxu0 %v52_v23 }
  0x2c   :  { %638 = vset.pattern.permute.xlu1 %v670_v2  ;;  %560 = vmatpush3.msra.mxu0 %v52_v23 }
  0x2d   :  { %82 = vperm.xlu1 %638, %v36_v30   ;;  %561 = vmatprep.subr.mxu0 %v51_v26 }
  0x2e   :  { %562 = vmatpush3.msra.mxu0 %v51_v26 }
  0x2f   :  { %165 = vperm.xlu0 %644, %v37_v19   ;;  %563 = vmatprep.subr.mxu0 %v50_v27 }
  0x30   :  { %564 = vmatpush3.msra.mxu0 %v50_v27 }
  0x31   :  { %639 = vset.pattern.permute.xlu1 %v669_v1  ;;  %565 = vmatprep.subr.mxu0 %v49_v28 }
  0x32   :  { %162 = vperm.xlu1 %639, %v36_v30   ;;  %566 = vmatpush3.msra.mxu0 %v49_v28 }
  0x33   :  { %171 = vperm.xlu0 %644, %v39_v24   ;;  %567 = vmatprep.subr.mxu0 %v48_v29 }
  0x34   :  { %568 = vmatpush3.msra.mxu0 %v48_v29 }
  0x36   :  { %186 = vperm.xlu1 %639, %v744_v16  }
  0x3a   :  { %640 = vset.pattern.permute.xlu1 %v670_v2 }
  0x3b   :  { %109 = vperm.xlu1 %640, %v45_v31  }
  0x3f   :  { %641 = vset.pattern.permute.xlu1 %v669_v1 }
  0x40   :  { %189 = vperm.xlu1 %641, %v45_v31  }
  0x44   :  { %642 = vset.pattern.permute.xlu1 %v670_v2 }
  0x45   :  { %88 = vperm.xlu1 %642, %v38_v32  }
  0x49   :  { %643 = vset.pattern.permute.xlu1 %v669_v1 }
  0x4a   :  { %168 = vperm.xlu1 %643, %v38_v32  }
  0x4e   :  { %192 = vperm.xlu1 %643, %v767_v22  }
  0x52   :  { %645 = vset.pattern.permute.xlu1 %v670_v2 }
  0x53   :  { %115 = vperm.xlu1 %645, %v47_v33  }
  0x57   :  { %646 = vset.pattern.permute.xlu1 %v669_v1 }
  0x58   :  { %195 = vperm.xlu1 %646, %v47_v33  }
  0x7d   :  { %v151_v36 = vpop.permute.xlu1 %150  ;;  %v71_v37 = vpop.permute.xlu0 %70 }
  0x7e   :  { %vm197_vm0 = vcmp.eq.s32.totalorder %v818_v35, %v151_v36  ;;  %vm117_vm1 = vcmp.eq.s32.totalorder %v818_v35, %v71_v37 }
  0x7f   :  { %v133_v38 = vsel %vm117_vm1, 1, %v670_v2  ;;  %v213_v39 = vsel %vm197_vm0, 1, %v670_v2 }
  0x80   :  { %v229_v40 = vadd.s32 %v213_v39, %v133_v38 }
  0x81   :  { %v175_v41 = vpop.permute.xlu1 %174  ;;  %v95_v42 = vpop.permute.xlu0 %94 }
  0x82   :  { %vm205_vm2 = vcmp.eq.s32.totalorder %v818_v35, %v175_v41  ;;  %vm125_vm3 = vcmp.eq.s32.totalorder %v818_v35, %v95_v42  ;;  %v245_v43 = vcvt.s32.f32 %v229_v40 }
  0x83   :  { %v141_v44 = vsel %vm125_vm3, 1, %v670_v2  ;;  %v221_v45 = vsel %vm205_vm2, 1, %v670_v2 }
  0x84   :  { %569 = vmatprep.mubr.f32.mxu0 %v245_v43  ;;  %v237_v46 = vadd.s32 %v221_v45, %v141_v44 }
  0x85   :  { %v74_v47 = vpop.permute.xlu0 %73 }
  0x86   :  { %v98_v48 = vpop.permute.xlu1 %97  ;;  %v253_v49 = vcvt.s32.f32 %v237_v46  ;;  %vm118_vm9 = vcmp.eq.s32.totalorder %v818_v35, %v74_v47 }
  0x87   :  { %vm126_vm4 = vcmp.eq.s32.totalorder %v818_v35, %v98_v48  ;;  %v134_v7 = vsel %vm118_vm9, 1, %v670_v2 }
  0x88   :  { %581 = vmatprep.mubr.f32.mxu1 %v253_v49  ;;  %v142_v52 = vsel %vm126_vm4, 1, %v670_v2 }
  0x89   :  { %v101_v50 = vpop.permute.xlu0 %100 }
  0x8a   :  { %vm127_vm6 = vcmp.eq.s32.totalorder %v818_v35, %v101_v50 }
  0x8b   :  { %v178_v51 = vpop.permute.xlu1 %177  ;;  %v143_v61 = vsel %vm127_vm6, 1, %v670_v2 }
  0x8c   :  { %vm206_vm5 = vcmp.eq.s32.totalorder %v818_v35, %v178_v51 }
  0x8d   :  { %v222_v53 = vsel %vm206_vm5, 1, %v670_v2  ;;  %v80_v54 = vpop.permute.xlu0 %79 }
  0x8e   :  { %v238_v55 = vadd.s32 %v222_v53, %v142_v52  ;;  %vm120_vm14 = vcmp.eq.s32.totalorder %v818_v35, %v80_v54 }
  0x8f   :  { %v136_v19 = vsel %vm120_vm14, 1, %v670_v2 }
  0x90   :  { %v254_v56 = vcvt.s32.f32 %v238_v55  ;;  %v77_v57 = vpop.permute.xlu1 %76 }
  0x91   :  { %v832_v58 = vpop.permute.xlu0 %106  ;;  %vm119_vm10 = vcmp.eq.s32.totalorder %v818_v35, %v77_v57 }
  0x92   :  { %582 = vmatmul.mubr.f32.vlgmr.msra.gmra.mxu1 %v254_v56  ;;  %v135_v9 = vsel %vm119_vm10, 1, %v670_v2  ;;  %vm129_vm4 = vcmp.eq.s32.totalorder %v818_v35, %v832_v58 }
  0x93   :  { %v145_v37 = vsel %vm129_vm4, 1, %v670_v2 }
  0x95   :  { %v157_v59 = vpop.permute.xlu1 %156  ;;  %v86_v60 = vpop.permute.xlu0 %85 }
  0x96   :  { %vm199_vm8 = vcmp.eq.s32.totalorder %v818_v35, %v157_v59  ;;  %vm122_vm0 = vcmp.eq.s32.totalorder %v818_v35, %v86_v60 }
  0x97   :  { %v215_v6 = vsel %vm199_vm8, 1, %v670_v2  ;;  %v138_v29 = vsel %vm122_vm0, 1, %v670_v2 }
  0x98   :  { %v231_v11 = vadd.s32 %v215_v6, %v135_v9 }
  0x99   :  { %v181_v62 = vpop.permute.xlu1 %180  ;;  %v836_v63 = vpop.permute.xlu0 %112 }
  0x9a   :  { %vm207_vm7 = vcmp.eq.s32.totalorder %v818_v35, %v181_v62  ;;  %v247_v20 = vcvt.s32.f32 %v231_v11 }
  0x9b   :  { %v223_v0 = vsel %vm207_vm7, 1, %v670_v2 }
  0x9c   :  { %v239_v1 = vadd.s32 %v223_v0, %v143_v61 }
  0x9d   :  { %v840_v3 = vpop.permute.xlu0 %91 }
  0x9e   :  { %v255_v4 = vcvt.s32.f32 %v239_v1  ;;  %v104_v5 = vpop.permute.xlu1 %103  ;;  %vm124_vm9 = vcmp.eq.s32.totalorder %v818_v35, %v840_v3 }
  0x9f   :  { %vm128_vm11 = vcmp.eq.s32.totalorder %v818_v35, %v104_v5  ;;  %v140_v52 = vsel %vm124_vm9, 1, %v670_v2 }
  0xa0   :  { %584 = vmatprep.mubr.f32.mxu1 %v255_v4  ;;  %v144_v13 = vsel %vm128_vm11, 1, %v670_v2 }
  0xa2   :  { %v154_v8 = vpop.permute.xlu0 %153 }
  0xa3   :  { %vm198_vm12 = vcmp.eq.s32.totalorder %v818_v35, %v154_v8  ;;  %v184_v10 = vpop.permute.xlu1 %183 }
  0xa4   :  { %v214_v12 = vsel %vm198_vm12, 1, %v670_v2  ;;  %vm208_vm13 = vcmp.eq.s32.totalorder %v818_v35, %v184_v10  ;;  %vm131_vm12 = vcmp.eq.s32.totalorder %v818_v35, %v836_v63 }
  0xa5   :  { %v230_v14 = vadd.s32 %v214_v12, %v134_v7  ;;  %v224_v15 = vsel %vm208_vm13, 1, %v670_v2  ;;  %v147_v59 = vsel %vm131_vm12, 1, %v670_v2 }
  0xa6   :  { %v240_v16 = vadd.s32 %v224_v15, %v144_v13  ;;  %v160_v17 = vpop.permute.xlu0 %159 }
  0xa7   :  { %v246_v18 = vcvt.s32.f32 %v230_v14  ;;  %vm200_vm15 = vcmp.eq.s32.totalorder %v818_v35, %v160_v17 }
  0xa8   :  { %v256_v21 = vcvt.s32.f32 %v240_v16  ;;  %v216_v22 = vsel %vm200_vm15, 1, %v670_v2  ;;  %v83_v23 = vpop.permute.xlu1 %82 }
  0xa9   :  { %v232_v24 = vadd.s32 %v216_v22, %v136_v19  ;;  %570 = vmatmul.mubr.f32.vlgmr.msra.gmra.mxu0 %v246_v18  ;;  %vm121_vm2 = vcmp.eq.s32.totalorder %v818_v35, %v83_v23 }
  0xaa   :  { %572 = vmatprep.mubr.f32.mxu0 %v247_v20  ;;  %585 = vmatmul.mubr.f32.gmra.mxu1 %v256_v21  ;;  %v166_v25 = vpop.permute.xlu0 %165  ;;  %v137_v30 = vsel %vm121_vm2, 1, %v670_v2 }
  0xab   :  { %v248_v26 = vcvt.s32.f32 %v232_v24  ;;  %vm202_vm1 = vcmp.eq.s32.totalorder %v818_v35, %v166_v25 }
  0xac   :  { %v218_v27 = vsel %vm202_vm1, 1, %v670_v2 }
  0xad   :  { %v163_v28 = vpop.permute.xlu1 %162  ;;  %573 = vmatmul.mubr.f32.gmra.mxu0 %v248_v26  ;;  %v234_v31 = vadd.s32 %v218_v27, %v138_v29 }
  0xae   :  { %vm201_vm3 = vcmp.eq.s32.totalorder %v818_v35, %v163_v28  ;;  %v172_v46 = vpop.permute.xlu0 %171 }
  0xaf   :  { %v217_v32 = vsel %vm201_vm3, 1, %v670_v2  ;;  %v250_v38 = vcvt.s32.f32 %v234_v31  ;;  %vm204_vm8 = vcmp.eq.s32.totalorder %v818_v35, %v172_v46 }
  0xb0   :  { %v233_v33 = vadd.s32 %v217_v32, %v137_v30  ;;  %v220_v50 = vsel %vm204_vm8, 1, %v670_v2 }
  0xb1   :  { %v187_v34 = vpop.permute.xlu1 %186  ;;  %v236_v53 = vadd.s32 %v220_v50, %v140_v52 }
  0xb2   :  { %v249_v36 = vcvt.s32.f32 %v233_v33  ;;  %vm209_vm5 = vcmp.eq.s32.totalorder %v818_v35, %v187_v34 }
  0xb3   :  { %v225_v39 = vsel %vm209_vm5, 1, %v670_v2  ;;  %v252_v60 = vcvt.s32.f32 %v236_v53 }
  0xb4   :  { %v241_v40 = vadd.s32 %v225_v39, %v145_v37  ;;  %575 = vmatprep.mubr.f32.mxu0 %v249_v36 }
  0xb5   :  { %576 = vmatmul.mubr.f32.gmra.mxu0 %v250_v38 }
  0xb6   :  { %v257_v41 = vcvt.s32.f32 %v241_v40  ;;  %v110_v42 = vpop.permute.xlu1 %109 }
  0xb7   :  { %vm130_vm6 = vcmp.eq.s32.totalorder %v818_v35, %v110_v42 }
  0xb8   :  { %587 = vmatprep.mubr.f32.mxu1 %v257_v41  ;;  %v146_v44 = vsel %vm130_vm6, 1, %v670_v2 }
  0xbb   :  { %v190_v43 = vpop.permute.xlu1 %189 }
  0xbc   :  { %vm210_vm7 = vcmp.eq.s32.totalorder %v818_v35, %v190_v43 }
  0xbd   :  { %v226_v45 = vsel %vm210_vm7, 1, %v670_v2 }
  0xbe   :  { %v242_v47 = vadd.s32 %v226_v45, %v146_v44 }
  0xc0   :  { %v258_v48 = vcvt.s32.f32 %v242_v47  ;;  %v89_v49 = vpop.permute.xlu1 %88 }
  0xc1   :  { %vm123_vm10 = vcmp.eq.s32.totalorder %v818_v35, %v89_v49 }
  0xc2   :  { %588 = vmatmul.mubr.f32.gmra.mxu1 %v258_v48  ;;  %v139_v54 = vsel %vm123_vm10, 1, %v670_v2 }
  0xc5   :  { %v169_v51 = vpop.permute.xlu1 %168 }
  0xc6   :  { %vm203_vm11 = vcmp.eq.s32.totalorder %v818_v35, %v169_v51 }
  0xc7   :  { %v219_v55 = vsel %vm203_vm11, 1, %v670_v2 }
  0xc8   :  { %v235_v56 = vadd.s32 %v219_v55, %v139_v54 }
  0xc9   :  { %v193_v57 = vpop.permute.xlu1 %192 }
  0xca   :  { %v251_v58 = vcvt.s32.f32 %v235_v56  ;;  %vm211_vm13 = vcmp.eq.s32.totalorder %v818_v35, %v193_v57 }
  0xcb   :  { %v227_v61 = vsel %vm211_vm13, 1, %v670_v2 }
  0xcc   :  { %v243_v62 = vadd.s32 %v227_v61, %v147_v59  ;;  %578 = vmatprep.mubr.f32.mxu0 %v251_v58 }
  0xcd   :  { %579 = vmatmul.mubr.f32.gmra.mxu0 %v252_v60 }
  0xce   :  { %v259_v0 = vcvt.s32.f32 %v243_v62  ;;  %v116_v1 = vpop.permute.xlu1 %115 }
  0xcf   :  { %vm132_vm14 = vcmp.eq.s32.totalorder %v818_v35, %v116_v1 }
  0xd0   :  { %590 = vmatprep.mubr.f32.mxu1 %v259_v0  ;;  %v148_v63 = vsel %vm132_vm14, 1, %v670_v2 }
  0xd3   :  { %v196_v3 = vpop.permute.xlu1 %195 }
  0xd4   :  { %vm212_vm15 = vcmp.eq.s32.totalorder %v818_v35, %v196_v3 }
  0xd5   :  { %v228_v4 = vsel %vm212_vm15, 1, %v670_v2 }
  0xd6   :  { %v244_v5 = vadd.s32 %v228_v4, %v148_v63 }
  0xd8   :  { %v260_v6 = vcvt.s32.f32 %v244_v5 }
  0xda   :  { %591 = vmatmul.mubr.f32.gmra.mxu1 %v260_v6 }
 0x152   :  { %v583_v7 = vpop.f32.mrf.mxu1 }
 0x153   :  { %482 = vst [vmem:[#allocation3 + $0x48] sm:$0xff] %v583_v7 }
 0x154   :  { %v383_v8 = vpop.f32.mrf.mxu1 }
 0x155   :  { %481 = vst [vmem:[#allocation3 + $0x40] sm:$0xff] %v383_v8 }
 0x169   :  { %v571_v9 = vpop.f32.mrf.mxu0 }
 0x16a   :  { %474 = vst [vmem:[#allocation3 + $0x8] sm:$0xff] %v571_v9  ;;  %v586_v10 = vpop.f32.mrf.mxu1 }
 0x16b   :  { %484 = vst [vmem:[#allocation3 + $0x58] sm:$0xff] %v586_v10  ;;  %v343_v11 = vpop.f32.mrf.mxu0 }
 0x16c   :  { %473 = vst [vmem:[#allocation3] sm:$0xff] %v343_v11  ;;  %v393_v12 = vpop.f32.mrf.mxu1 }
 0x16d   :  { %483 = vst [vmem:[#allocation3 + $0x50] sm:$0xff] %v393_v12  ;;  %v574_v35 = vpop.f32.mrf.mxu0 }
 0x16e   :  { %476 = vst [vmem:[#allocation3 + $0x18] sm:$0xff] %v574_v35 }
 0x16f   :  { %v353_v13 = vpop.f32.mrf.mxu0 }
 0x170   :  { %475 = vst [vmem:[#allocation3 + $0x10] sm:$0xff] %v353_v13 }
 0x175   :  { %v577_v2 = vpop.f32.mrf.mxu0 }
 0x176   :  { %478 = vst [vmem:[#allocation3 + $0x28] sm:$0xff] %v577_v2 }
 0x177   :  { %v363_v14 = vpop.f32.mrf.mxu0 }
 0x178   :  { %477 = vst [vmem:[#allocation3 + $0x20] sm:$0xff] %v363_v14 }
 0x182   :  { %v589_v15 = vpop.f32.mrf.mxu1 }
 0x183   :  { %486 = vst [vmem:[#allocation3 + $0x68] sm:$0xff] %v589_v15 }
 0x184   :  { %v403_v16 = vpop.f32.mrf.mxu1 }
 0x185   :  { %485 = vst [vmem:[#allocation3 + $0x60] sm:$0xff] %v403_v16 }
 0x18d   :  { %v580_v17 = vpop.f32.mrf.mxu0 }
 0x18e   :  { %480 = vst [vmem:[#allocation3 + $0x38] sm:$0xff] %v580_v17 }
 0x18f   :  { %v373_v18 = vpop.f32.mrf.mxu0 }
 0x190   :  { %479 = vst [vmem:[#allocation3 + $0x30] sm:$0xff] %v373_v18 }
 0x19a   :  { %v592_v19 = vpop.f32.mrf.mxu1 }
 0x19b   :  { %488 = vst [vmem:[#allocation3 + $0x78] sm:$0xff] %v592_v19 }
 0x19c   :  { %v413_v20 = vpop.f32.mrf.mxu1 }
 0x19d   :  { %487 = vst [vmem:[#allocation3 + $0x70] sm:$0xff] %v413_v20 }
 0x19e   :  { %658 = shalt.err (!%p655_p4)
}
 0x19f   :  { %s672_s18 = smov 128   ;;  %s673_s19 = smov 8  }
 0x1a0   :  { %500 = dma.vmem_to_hbm [thread:$0]  %s495_s16, 2048, %s898_s2, [#allocation4], %s672_s18, %s672_s18, %s673_s19  }
 0x1a1   :  { %667 = dma.done.wait [#allocation4], 2048  }
 0x1a2   :  { %668 = vsyncadd [#allocation4], 4294965248 }
 0x1a3   :  { %504 = vsyncpa [#allocation4], 1 }

</bundles_post_ra>
